<compile_context>
chip_gen: v5e
topology: v5e:2x2
jax: 0.10.0
libtpu: 0.0.40
codegen_flags: <defaults>
</compile_context>

<pallas_src>
import jax
import jax.numpy as jnp
from jax.experimental import pallas as pl
from jax.experimental.pallas import tpu as pltpu


# ---------------------------------------------------------------------------
# Kernel: one (TM, H) row tile of x  x  one (H, C) chunk of W1^T
# ---------------------------------------------------------------------------
def _make_kernel(n_chunks, fold):
    """Refs:
      x     : (TM, H)      row tile, native dtype (straight into the MXU)
      w1t   : (H, C)       ff1 weight chunk, pre-transposed
      b1    : (1, C)       ff1 bias chunk (f32)
      w2    : (1, C)       ff2 weight chunk as a row (f32)
      b2    : (1,) [SMEM]  ff2 bias scalar (f32)
      out   : (1, TM)      lane-dense output row
      acc   : (TM, 128)    f32 per-lane partial sums, persists across chunks
    """

    def kernel(x_ref, w1t_ref, b1_ref, w2_ref, b2_ref, o_ref, acc_ref):
        k = pl.program_id(1)

        @pl.when(k == 0)
        def _init():
            acc_ref[...] = jnp.zeros_like(acc_ref)

        # ff1 chunk on the MXU, f32 accumulation; ReLU on the VPU.
        h = jnp.dot(x_ref[...], w1t_ref[...],
                    preferred_element_type=jnp.float32)
        h = jnp.maximum(h + b1_ref[...], 0.0)            # b1 already f32

        # ff2 chunk: width-1 output -> VPU multiply + 128-lane partial-sum
        # fold (a [TM,C]x[C,1] matmul would waste 127/128 MXU lanes; the one
        # cross-lane XLU reduce is deferred to the last chunk).
        p = h * w2_ref[...]                              # (TM, C) f32, VPU
        part = p[:, 0:128]
        for j in range(1, fold):                         # lane-aligned slices
            part = part + p[:, j * 128:(j + 1) * 128]
        acc_ref[...] += part

        @pl.when(k == n_chunks - 1)
        def _finalize():
            # One XLU transpose + sublane reduce per row tile; the (1, TM)
            # result is lane-dense so the writeback is a contiguous store.
            acc_t = jnp.transpose(acc_ref[...])          # (128, TM)
            row = jnp.sum(acc_t, axis=0, keepdims=True) + b2_ref[0]
            o_ref[...] = row.astype(o_ref.dtype)

    return kernel


# ---------------------------------------------------------------------------
# Parameter layout (done once at init, not per forward call)
# ---------------------------------------------------------------------------
def prepare_params(w1, b1, w2, b2):
    """w1:(4H,H) b1:(4H,) w2:(1,4H) b2:(1,) -> kernel-friendly layout.

    W1^T keeps its native (MXU) dtype; b1/w2/b2 are pre-cast to f32 so the
    kernel never casts the bias/weight rows per grid step.  The 4H axis is
    zero-padded to a multiple of 128 so chunks are lane-aligned (padded
    columns contribute relu(0)*0 = 0)."""
    h4, h = w1.shape
    h4p = ((h4 + 127) // 128) * 128
    pad = h4p - h4
    w1t = jnp.pad(jnp.transpose(w1), ((0, 0), (0, pad)))          # (H, 4Hp)
    b1r = jnp.pad(b1.astype(jnp.float32), (0, pad)).reshape(1, h4p)
    w2r = jnp.pad(w2.reshape(-1).astype(jnp.float32),
                  (0, pad)).reshape(1, h4p)
    b2r = b2.reshape(1).astype(jnp.float32)
    return w1t, b1r, w2r, b2r


# ---------------------------------------------------------------------------
# Wrapper
# ---------------------------------------------------------------------------
def _round_up(x, m):
    return ((x + m - 1) // m) * m


def _choose_tm(n, h, xsz):
    # Bigger row tiles amortize the ~0.35 us per-grid-step overhead (matters
    # most on v7x: 2 TCs, 3.2 TB/s HBM).  Cap so the double-buffered x tile
    # stays a few MiB; keep TM a multiple of 128 so the lane-dense (1, TM)
    # output block and the final (TM,128)->(128,TM) transpose are aligned.
    tm = 1024
    while tm > 128 and (tm * h * xsz > (4 << 20) or tm >= 2 * n):
        tm //= 2
    return tm                                   # one of {128, 256, 512, 1024}


def baseline_estimator(x, params, mean=False):
    """Forward pass of BaselineEstimator.

    x      : (..., H) input
    params : output of prepare_params(w1, b1, w2, b2)
    returns: (..., 1)  (axis 0 collapsed first if mean=True, as in PyTorch)
    """
    w1t, b1r, w2r, b2r = params

    x = jax.lax.stop_gradient(x)                # input.detach()
    if mean:
        # TODO(synk): fuse the axis-0 mean into the kernel (extra grid axis +
        # accumulator) to save one full HBM pass when this path is hot.
        x = jnp.mean(x, axis=0)

    lead_shape = x.shape[:-1]
    H = x.shape[-1]
    H4p = w1t.shape[1]
    assert w1t.shape[0] == H, "params do not match input hidden size"

    N = 1
    for d in lead_shape:
        N *= d
    x2d = x.reshape(N, H)

    xsz = jnp.dtype(x.dtype).itemsize
    wsz = jnp.dtype(w1t.dtype).itemsize
    osz = xsz

    # Row tiling (padded rows compute garbage that is sliced off below).
    TM = _choose_tm(N, H, xsz)
    N_pad = _round_up(N, TM)
    if N_pad != N:
        x2d = jnp.pad(x2d, ((0, N_pad - N), (0, 0)))
    n_tiles = N_pad // TM

    # Hidden-dim chunking: keep the full W1^T resident when it is small,
    # otherwise stream it in (H, C) blocks along the grid reduction axis.
    if 2 * H * H4p * wsz <= (12 << 20):
        C = H4p
    elif H4p % 512 == 0:
        C = 512
    elif H4p % 256 == 0:
        C = 256
    else:
        C = 128                 # H4p is always a multiple of 128
    n_chunks = H4p // C
    fold = C // 128

    grid = (n_tiles, n_chunks)

    # VMEM: double-buffered x / W1^T chunk / bias rows / out tile, plus the
    # f32 accumulator scratch and the h, h*w2 temporaries.
    need = (2 * TM * H * xsz          # x tile
            + 2 * H * C * wsz         # W1^T chunk
            + 4 * C * 4               # b1 + w2 chunks (f32)
            + 2 * TM * osz            # (1, TM) out tile
            + TM * 128 * 4            # acc scratch
            + 2 * TM * C * 4)         # h and h*w2 f32 temporaries
    try:
        vmem_cap = int(pltpu.get_tpu_info().vmem_capacity_bytes)
    except Exception:
        vmem_cap = 64 << 20           # v7x per-core VMEM; safe on v5e/v6e too
    vmem_limit = int(min(max(need + (4 << 20), 32 << 20),
                         vmem_cap - (2 << 20)))

    weight_passes = n_tiles if n_chunks > 1 else 1
    cost = pl.CostEstimate(
        flops=2 * N_pad * H * H4p + 2 * N_pad * H4p,
        transcendentals=0,
        bytes_accessed=(N_pad * H * xsz
                        + weight_passes * H * H4p * wsz
                        + 2 * H4p * 4
                        + N_pad * osz),
    )

    out = pl.pallas_call(
        _make_kernel(n_chunks, fold),
        out_shape=jax.ShapeDtypeStruct((1, N_pad), x.dtype),
        grid=grid,
        in_specs=[
            pl.BlockSpec((TM, H), lambda i, k: (i, 0)),          # x row tile
            pl.BlockSpec((H, C), lambda i, k: (0, k)),           # W1^T chunk
            pl.BlockSpec((1, C), lambda i, k: (0, k)),           # b1 chunk
            pl.BlockSpec((1, C), lambda i, k: (0, k)),           # w2 chunk
            pl.BlockSpec(memory_space=pltpu.MemorySpace.SMEM),   # b2 scalar
        ],
        out_specs=pl.BlockSpec((1, TM), lambda i, k: (0, i)),    # lane-dense
        scratch_shapes=[pltpu.VMEM((TM, 128), jnp.float32)],
        compiler_params=pltpu.CompilerParams(
            dimension_semantics=("parallel", "arbitrary"),
            vmem_limit_bytes=vmem_limit,
        ),
        cost_estimate=cost,
    )(x2d, w1t, b1r, w2r, b2r)

    out = out[0, :N]
    return out.reshape(*lead_shape, 1)


# ---------------------------------------------------------------------------
# Init + reference
# ---------------------------------------------------------------------------
def init_params(key, input_size, dtype=jnp.float32):
    """torch.nn.Linear default init: U(-1/sqrt(fan_in), 1/sqrt(fan_in))."""
    h4 = input_size * 4
    k1, k2, k3, k4 = jax.random.split(key, 4)
    bound1 = 1.0 / jnp.sqrt(jnp.array(input_size, dtype))
    bound2 = 1.0 / jnp.sqrt(jnp.array(h4, dtype))
    w1 = jax.random.uniform(k1, (h4, input_size), dtype, -bound1, bound1)
    b1 = jax.random.uniform(k2, (h4,), dtype, -bound1, bound1)
    w2 = jax.random.uniform(k3, (1, h4), dtype, -bound2, bound2)
    b2 = jax.random.uniform(k4, (1,), dtype, -bound2, bound2)
    return w1, b1, w2, b2


def _reference(x, w1, b1, w2, b2, mean=False):
    if mean:
        x = jnp.mean(x, axis=0)
    h = jnp.maximum(x @ w1.T + b1, 0.0)
    return h @ w2.T + b2


# ---------------------------------------------------------------------------
# Demo / self-test
# ---------------------------------------------------------------------------
if __name__ == "__main__":
    key = jax.random.PRNGKey(0)
    k_in, k_par = jax.random.split(key)

    B, S, H = 2, 8, 32
    x = jax.random.normal(k_in, (B, S, H), jnp.float32)
    w1, b1, w2, b2 = init_params(k_par, H)
    params = prepare_params(w1, b1, w2, b2)   # layout hoisted out of fwd path

    # mean=False path
    out = baseline_estimator(x, params, mean=False)
    out = jax.block_until_ready(out)
    ref = _reference(x, w1, b1, w2, b2, mean=False)
    assert out.shape == (B, S, 1)
    assert jnp.allclose(out, ref, atol=1e-5, rtol=1e-5)

    # mean=True path (mean over axis 0 in glue, MLP in the kernel)
    out_m = baseline_estimator(x, params, mean=True)
    out_m = jax.block_until_ready(out_m)
    ref_m = _reference(x, w1, b1, w2, b2, mean=True)
    assert out_m.shape == (S, 1)
    assert jnp.allclose(out_m, ref_m, atol=1e-5, rtol=1e-5)

    print("KERNEL_OK")
</pallas_src>

<mosaic_0001>
module attributes {stable_mosaic.version = 11 : i64} {
  func.func @kernel(%arg0: i32, %arg1: i32, %arg2: memref<128x32xf32, #tpu.memory_space<vmem>>, %arg3: memref<32x128xf32, #tpu.memory_space<vmem>>, %arg4: memref<1x128xf32, #tpu.memory_space<vmem>>, %arg5: memref<1x128xf32, #tpu.memory_space<vmem>>, %arg6: memref<1xf32, #tpu.memory_space<smem>>, %arg7: memref<1x128xf32, #tpu.memory_space<vmem>>, %arg8: memref<128x128xf32, #tpu.memory_space<vmem>>) attributes {dimension_semantics = [#tpu.dimension_semantics<parallel>, #tpu.dimension_semantics<arbitrary>], iteration_bounds = array<i64: 1, 1>, scalar_prefetch = 0 : i64, scratch_operands = 1 : i64, tpu.core_type = #tpu.core_type<tc>, window_params = [{transform_indices = @transform_0, window_bounds = array<i64: 128, 32>}, {transform_indices = @transform_1, window_bounds = array<i64: 32, 128>}, {transform_indices = @transform_2, window_bounds = array<i64: 1, 128>}, {transform_indices = @transform_3, window_bounds = array<i64: 1, 128>}, {transform_indices = @transform_4, window_bounds = array<i64: 1>}, {transform_indices = @transform_5, window_bounds = array<i64: 1, 128>}]} {
    %c0_i32 = arith.constant 0 : i32
    %0 = arith.cmpi eq, %arg1, %c0_i32 : i32
    %1 = arith.extui %0 : i1 to i32
    %c0_i32_0 = arith.constant 0 : i32
    %2 = arith.cmpi ne, %1, %c0_i32_0 : i32
    scf.if %2 {
      %cst_15 = arith.constant 0.000000e+00 : f32
      %20 = vector.broadcast %cst_15 : f32 to vector<128x128xf32>
      %c0_16 = arith.constant 0 : index
      %c0_17 = arith.constant 0 : index
      %21 = vector.load %arg8[%c0_16, %c0_17] : memref<128x128xf32, #tpu.memory_space<vmem>>, vector<128x128xf32>
      tpu.vector_store %arg8[%c0_16, %c0_17], %20 {strides = array<i32>} : memref<128x128xf32, #tpu.memory_space<vmem>>, vector<128x128xf32>,
    } else {
    }
    %c0 = arith.constant 0 : index
    %c0_1 = arith.constant 0 : index
    %3 = vector.load %arg2[%c0, %c0_1] : memref<128x32xf32, #tpu.memory_space<vmem>>, vector<128x32xf32>
    %c0_2 = arith.constant 0 : index
    %c0_3 = arith.constant 0 : index
    %4 = vector.load %arg3[%c0_2, %c0_3] : memref<32x128xf32, #tpu.memory_space<vmem>>, vector<32x128xf32>
    %cst = arith.constant dense<0.000000e+00> : vector<128x128xf32>
    %5 = tpu.matmul %3, %4, %cst {dimension_numbers = #tpu.dot_dimension_numbers<[1], [0], [0], [1], [0, 0, 1, 1], [], []>} : vector<128x32xf32>, vector<32x128xf32>, vector<128x128xf32> -> vector<128x128xf32>
    %c0_4 = arith.constant 0 : index
    %c0_5 = arith.constant 0 : index
    %6 = vector.load %arg4[%c0_4, %c0_5] : memref<1x128xf32, #tpu.memory_space<vmem>>, vector<1x128xf32>
    %7 = vector.broadcast %6 : vector<1x128xf32> to vector<128x128xf32>
    %8 = arith.addf %5, %7 : vector<128x128xf32>
    %cst_6 = arith.constant 0.000000e+00 : f32
    %9 = vector.broadcast %cst_6 : f32 to vector<128x128xf32>
    %10 = arith.maximumf %8, %9 : vector<128x128xf32>
    %c0_7 = arith.constant 0 : index
    %c0_8 = arith.constant 0 : index
    %11 = vector.load %arg5[%c0_7, %c0_8] : memref<1x128xf32, #tpu.memory_space<vmem>>, vector<1x128xf32>
    %12 = vector.broadcast %11 : vector<1x128xf32> to vector<128x128xf32>
    %13 = arith.mulf %10, %12 : vector<128x128xf32>
    %c0_9 = arith.constant 0 : index
    %c0_10 = arith.constant 0 : index
    %14 = vector.load %arg8[%c0_9, %c0_10] : memref<128x128xf32, #tpu.memory_space<vmem>>, vector<128x128xf32>
    %15 = arith.addf %14, %13 : vector<128x128xf32>
    %c0_11 = arith.constant 0 : index
    %c0_12 = arith.constant 0 : index
    %16 = vector.load %arg8[%c0_11, %c0_12] : memref<128x128xf32, #tpu.memory_space<vmem>>, vector<128x128xf32>
    tpu.vector_store %arg8[%c0_11, %c0_12], %15 {strides = array<i32>} : memref<128x128xf32, #tpu.memory_space<vmem>>, vector<128x128xf32>,
    %c0_i32_13 = arith.constant 0 : i32
    %17 = arith.cmpi eq, %arg1, %c0_i32_13 : i32
    %18 = arith.extui %17 : i1 to i32
    %c0_i32_14 = arith.constant 0 : i32
    %19 = arith.cmpi ne, %18, %c0_i32_14 : i32
    scf.if %19 {
      %c0_15 = arith.constant 0 : index
      %c0_16 = arith.constant 0 : index
      %20 = vector.load %arg8[%c0_15, %c0_16] : memref<128x128xf32, #tpu.memory_space<vmem>>, vector<128x128xf32>
      %21 = tpu.transpose %20, [1, 0] : vector<128x128xf32> -> vector<128x128xf32>
      %cst_17 = arith.constant dense<0.000000e+00> : vector<128xf32>
      %22 = vector.multi_reduction <add>, %21, %cst_17 [0] : vector<128x128xf32> to vector<128xf32>
      %23 = vector.shape_cast %22 : vector<128xf32> to vector<1x128xf32>
      %c0_18 = arith.constant 0 : index
      %24 = memref.load %arg6[%c0_18] : memref<1xf32, #tpu.memory_space<smem>>
      %25 = vector.broadcast %24 : f32 to vector<1x128xf32>
      %26 = arith.addf %23, %25 : vector<1x128xf32>
      %c0_19 = arith.constant 0 : index
      %c0_20 = arith.constant 0 : index
      %27 = vector.load %arg7[%c0_19, %c0_20] : memref<1x128xf32, #tpu.memory_space<vmem>>, vector<1x128xf32>
      tpu.vector_store %arg7[%c0_19, %c0_20], %26 {strides = array<i32>} : memref<1x128xf32, #tpu.memory_space<vmem>>, vector<1x128xf32>,
    } else {
    }
    return
  }
  func.func @transform_0(%arg0: i32, %arg1: i32) -> (i32, i32) {
    %c0_i32 = arith.constant 0 : i32
    %c0_i32_0 = arith.constant 0 : i32
    return %arg0, %c0_i32 : i32, i32
  }
  func.func @transform_1(%arg0: i32, %arg1: i32) -> (i32, i32) {
    %c0_i32 = arith.constant 0 : i32
    %c0_i32_0 = arith.constant 0 : i32
    return %c0_i32, %arg1 : i32, i32
  }
  func.func @transform_2(%arg0: i32, %arg1: i32) -> (i32, i32) {
    %c0_i32 = arith.constant 0 : i32
    %c0_i32_0 = arith.constant 0 : i32
    return %c0_i32, %arg1 : i32, i32
  }
  func.func @transform_3(%arg0: i32, %arg1: i32) -> (i32, i32) {
    %c0_i32 = arith.constant 0 : i32
    %c0_i32_0 = arith.constant 0 : i32
    return %c0_i32, %arg1 : i32, i32
  }
  func.func @transform_4(%arg0: i32, %arg1: i32) -> i32 {
    %c0_i32 = arith.constant 0 : i32
    %c0_i32_0 = arith.constant 0 : i32
    return %c0_i32 : i32
  }
  func.func @transform_5(%arg0: i32, %arg1: i32) -> (i32, i32) {
    %c0_i32 = arith.constant 0 : i32
    %c0_i32_0 = arith.constant 0 : i32
    return %c0_i32, %arg0 : i32, i32
  }
}

</mosaic_0001>

<bundles_post_ra>
// kernel: tpu_custom_call.1
= control target key start
LH: loop header
LB: loop body
LE: loop exit
PB: predicated region body
PF: predicated region fallthrough
CT: control target
= control target key end

     0   :  { %vm66_vm0 = vcmask 261120   ;;  %s568_s0 = inlined_call_operand.vmem [shape: f32[128,32], index: 0, kind: input, shape index: {}]   ;;  %s569_s1 = inlined_call_operand.vmem [shape: f32[32,128], index: 1, kind: input, shape index: {}]   ;;  %s570_s2 = inlined_call_operand.vmem [shape: f32[1,128], index: 2, kind: input, shape index: {}]   ;;  %s571_s3 = inlined_call_operand.vmem [shape: f32[1,128], index: 3, kind: input, shape index: {}]   ;;  %s572_s4 = inlined_call_operand.<no memory space> [shape: f32[1], index: 4, kind: input, shape index: {}]   ;;  %s573_s5 = inlined_call_operand.hbm [shape: f32[1,128], index: 5, kind: output, shape index: {}]  }
   0x1   :  { %v61_v0 = vld [vmem:[%s569_s1 + $0x18] sm:$0xff]  ;;  %v60_v1 = vld [vmem:[%s569_s1 + $0x10] sm:$0xff]  ;;  %v59_v2 = vld [vmem:[%s569_s1 + $0x8] sm:$0xff] }
   0x2   :  { %127 = vmatpush.msra.mxu0 %v61_v0  ;;  %372 = vmatpush.msra.mxu1 %v61_v0  ;;  %v58_v3 = vld [vmem:[%s569_s1] sm:$0xff] }
   0x3   :  { %373 = vmatpush.msra.mxu2 %v61_v0  ;;  %374 = vmatpush.msra.mxu3 %v61_v0  ;;  %v42_v4 = vld [vmem:[%s568_s0] sm:$0xff] }
   0x4   :  { %128 = vmatpush.msra.mxu0 %v60_v1  ;;  %375 = vmatpush.msra.mxu1 %v60_v1  ;;  %v46_v5 = vld [vmem:[%s568_s0 + $0x20] sm:$0xff] }
   0x5   :  { %376 = vmatpush.msra.mxu2 %v60_v1  ;;  %377 = vmatpush.msra.mxu3 %v60_v1  ;;  %v50_v6 = vld [vmem:[%s568_s0 + $0x40] sm:$0xff] }
   0x6   :  { %129 = vmatpush.msra.mxu0 %v59_v2  ;;  %378 = vmatpush.msra.mxu1 %v59_v2  ;;  %v54_v7 = vld [vmem:[%s568_s0 + $0x60] sm:$0xff] }
   0x7   :  { %379 = vmatpush.msra.mxu2 %v59_v2  ;;  %380 = vmatpush.msra.mxu3 %v59_v2 }
   0x8   :  { %130 = vmatpush.msra.mxu0 %v58_v3  ;;  %381 = vmatpush.msra.mxu1 %v58_v3 }
   0x9   :  { %11 = vsyncpa [#allocation5], 0  ;;  %356 = vmatmul.msk.f32.vlgmr.msra.gmra.mxu0 %vm66_vm0, %v42_v4  ;;  %360 = vmatmul.msk.f32.vlgmr.msra.gmra.mxu1 %vm66_vm0, %v46_v5  ;;  %v43_v8 = vld [vmem:[%s568_s0 + $0x8] sm:$0xff]  ;;  %v44_v12 = vld [vmem:[%s568_s0 + $0x10] sm:$0xff]  ;;  %s347_s13 = sshll.u32 %s573_s5, 4  ;;  %s348_s13 = int_to_ptr.hbm [resolvable:$true] %s347_s13 }
   0xa   :  { %382 = vmatpush.msra.mxu2 %v58_v3  ;;  %383 = vmatpush.msra.mxu3 %v58_v3  ;;  %v47_v9 = vld [vmem:[%s568_s0 + $0x28] sm:$0xff]  ;;  %v48_v13 = vld [vmem:[%s568_s0 + $0x30] sm:$0xff]  ;;  %v45_v16 = vld [vmem:[%s568_s0 + $0x18] sm:$0xff] }
   0xb   :  { %364 = vmatmul.msk.f32.vlgmr.msra.gmra.mxu2 %vm66_vm0, %v50_v6  ;;  %368 = vmatmul.msk.f32.vlgmr.msra.gmra.mxu3 %vm66_vm0, %v54_v7  ;;  %v51_v10 = vld [vmem:[%s568_s0 + $0x48] sm:$0xff]  ;;  %v52_v14 = vld [vmem:[%s568_s0 + $0x50] sm:$0xff]  ;;  %v49_v17 = vld [vmem:[%s568_s0 + $0x38] sm:$0xff] }
   0xc   :  { %v55_v11 = vld [vmem:[%s568_s0 + $0x68] sm:$0xff]  ;;  %v56_v15 = vld [vmem:[%s568_s0 + $0x70] sm:$0xff]  ;;  %v53_v18 = vld [vmem:[%s568_s0 + $0x58] sm:$0xff] }
   0xd   :  { %v57_v19 = vld [vmem:[%s568_s0 + $0x78] sm:$0xff]  ;;  %v523_v20 = vld [vmem:[%s570_s2] ss:$0 sm:$0xff] }
   0xe   :  { %v529_v23 = vld [vmem:[%s571_s3] ss:$0 sm:$0xff]  ;;  %s413_s3 = smov [#allocation4]  }
   0xf   :  { %s345_s10 = sshll.u32 %s413_s3, 4  ;;  %s346_s10 = int_to_ptr.vmem [resolvable:$true] %s345_s10 }
  0x11   :  { %357 = vmatmul.msk.f32.gmra.mxu0 %vm66_vm0, %v43_v8  ;;  %361 = vmatmul.msk.f32.gmra.mxu1 %vm66_vm0, %v47_v9 }
  0x13   :  { %365 = vmatmul.msk.f32.gmra.mxu2 %vm66_vm0, %v51_v10  ;;  %369 = vmatmul.msk.f32.gmra.mxu3 %vm66_vm0, %v55_v11 }
  0x19   :  { %358 = vmatmul.msk.f32.gmra.mxu0 %vm66_vm0, %v44_v12  ;;  %362 = vmatmul.msk.f32.gmra.mxu1 %vm66_vm0, %v48_v13 }
  0x1b   :  { %366 = vmatmul.msk.f32.gmra.mxu2 %vm66_vm0, %v52_v14  ;;  %370 = vmatmul.msk.f32.gmra.mxu3 %vm66_vm0, %v56_v15 }
  0x21   :  { %359 = vmatmul.msk.f32.gmra.mxu0 %vm66_vm0, %v45_v16  ;;  %363 = vmatmul.msk.f32.gmra.mxu1 %vm66_vm0, %v49_v17 }
  0x23   :  { %367 = vmatmul.msk.f32.gmra.mxu2 %vm66_vm0, %v53_v18  ;;  %371 = vmatmul.msk.f32.gmra.mxu3 %vm66_vm0, %v57_v19 }
  0x86   :  { %v132_v21 = vpop.f32.mrf.mxu0  ;;  %v144_v32 = vpop.f32.mrf.mxu1 }
  0x87   :  { %v133_v22 = vadd.f32 %v523_v20, %v132_v21  ;;  %v145_v38 = vadd.f32 %v523_v20, %v144_v32 }
  0x89   :  { %v180_v24 = vmax.f32 %v133_v22, 0.0  ;;  %v184_v41 = vmax.f32 %v145_v38, 0.0 }
  0x8b   :  { %v200_v25 = vmul.f32 %v529_v23, %v180_v24  ;;  %v204_v42 = vmul.f32 %v529_v23, %v184_v41 }
  0x8d   :  { %283 = vxpose.xlu0.b32.start [1/16] %v200_v25, 128 }
  0x8e   :  { %v135_v26 = vpop.f32.mrf.mxu0  ;;  %v147_v39 = vpop.f32.mrf.mxu1 }
  0x8f   :  { %v136_v27 = vadd.f32 %v523_v20, %v135_v26  ;;  %v148_v43 = vadd.f32 %v523_v20, %v147_v39  ;;  %v156_v50 = vpop.f32.mrf.mxu2  ;;  %v168_v2 = vpop.f32.mrf.mxu3 }
  0x90   :  { %v157_v55 = vadd.f32 %v523_v20, %v156_v50  ;;  %v169_v7 = vadd.f32 %v523_v20, %v168_v2 }
  0x91   :  { %v181_v28 = vmax.f32 %v136_v27, 0.0  ;;  %v185_v45 = vmax.f32 %v148_v43, 0.0 }
  0x92   :  { %v188_v57 = vmax.f32 %v157_v55, 0.0  ;;  %v192_v9 = vmax.f32 %v169_v7, 0.0 }
  0x93   :  { %v201_v29 = vmul.f32 %v529_v23, %v181_v28  ;;  %v205_v46 = vmul.f32 %v529_v23, %v185_v45 }
  0x94   :  { %v208_v58 = vmul.f32 %v529_v23, %v188_v57  ;;  %v212_v10 = vmul.f32 %v529_v23, %v192_v9 }
  0x95   :  { %284 = vxpose.xlu0.b32.cont [2/16] %v201_v29, 128 }
  0x96   :  { %v138_v30 = vpop.f32.mrf.mxu0  ;;  %v150_v44 = vpop.f32.mrf.mxu1 }
  0x97   :  { %v139_v31 = vadd.f32 %v523_v20, %v138_v30  ;;  %v151_v47 = vadd.f32 %v523_v20, %v150_v44  ;;  %v159_v56 = vpop.f32.mrf.mxu2  ;;  %v171_v8 = vpop.f32.mrf.mxu3 }
  0x98   :  { %v160_v59 = vadd.f32 %v523_v20, %v159_v56  ;;  %v172_v11 = vadd.f32 %v523_v20, %v171_v8 }
  0x99   :  { %v182_v33 = vmax.f32 %v139_v31, 0.0  ;;  %v186_v48 = vmax.f32 %v151_v47, 0.0 }
  0x9a   :  { %v189_v61 = vmax.f32 %v160_v59, 0.0  ;;  %v193_v13 = vmax.f32 %v172_v11, 0.0 }
  0x9b   :  { %v202_v34 = vmul.f32 %v529_v23, %v182_v33  ;;  %v206_v51 = vmul.f32 %v529_v23, %v186_v48 }
  0x9c   :  { %v209_v62 = vmul.f32 %v529_v23, %v189_v61  ;;  %v213_v14 = vmul.f32 %v529_v23, %v193_v13 }
  0x9d   :  { %285 = vxpose.xlu0.b32.cont [3/16] %v202_v34, 128 }
  0x9e   :  { %v141_v35 = vpop.f32.mrf.mxu0  ;;  %v153_v49 = vpop.f32.mrf.mxu1 }
  0x9f   :  { %v142_v36 = vadd.f32 %v523_v20, %v141_v35  ;;  %v154_v52 = vadd.f32 %v523_v20, %v153_v49  ;;  %v162_v60 = vpop.f32.mrf.mxu2  ;;  %v174_v12 = vpop.f32.mrf.mxu3 }
  0xa0   :  { %v163_v63 = vadd.f32 %v523_v20, %v162_v60  ;;  %v175_v15 = vadd.f32 %v523_v20, %v174_v12 }
  0xa1   :  { %v183_v37 = vmax.f32 %v142_v36, 0.0  ;;  %v187_v53 = vmax.f32 %v154_v52, 0.0 }
  0xa2   :  { %v190_v0 = vmax.f32 %v163_v63, 0.0  ;;  %v194_v16 = vmax.f32 %v175_v15, 0.0 }
  0xa3   :  { %v203_v40 = vmul.f32 %v529_v23, %v183_v37  ;;  %v207_v54 = vmul.f32 %v529_v23, %v187_v53 }
  0xa4   :  { %v210_v3 = vmul.f32 %v529_v23, %v190_v0  ;;  %v214_v18 = vmul.f32 %v529_v23, %v194_v16 }
  0xa5   :  { %286 = vxpose.xlu0.b32.cont [4/16] %v203_v40, 128 }
  0xa7   :  { %v165_v1 = vpop.f32.mrf.mxu2  ;;  %v177_v17 = vpop.f32.mrf.mxu3 }
  0xa8   :  { %v166_v4 = vadd.f32 %v523_v20, %v165_v1  ;;  %v178_v19 = vadd.f32 %v523_v20, %v177_v17 }
  0xaa   :  { %v191_v5 = vmax.f32 %v166_v4, 0.0  ;;  %v195_v21 = vmax.f32 %v178_v19, 0.0 }
  0xac   :  { %v211_v6 = vmul.f32 %v529_v23, %v191_v5  ;;  %v215_v22 = vmul.f32 %v529_v23, %v195_v21 }
  0xad   :  { %287 = vxpose.xlu0.b32.cont [5/16] %v204_v42, 128 }
  0xb5   :  { %288 = vxpose.xlu0.b32.cont [6/16] %v205_v46, 128 }
  0xbd   :  { %289 = vxpose.xlu0.b32.cont [7/16] %v206_v51, 128 }
  0xc5   :  { %290 = vxpose.xlu0.b32.cont [8/16] %v207_v54, 128 }
  0xcd   :  { %291 = vxpose.xlu0.b32.cont [9/16] %v208_v58, 128  ;;  %v337_v58 = vstv %s572_s4 }
  0xd5   :  { %292 = vxpose.xlu0.b32.cont [10/16] %v209_v62, 128 }
  0xdd   :  { %293 = vxpose.xlu0.b32.cont [11/16] %v210_v3, 128 }
  0xe5   :  { %294 = vxpose.xlu0.b32.cont [12/16] %v211_v6, 128 }
  0xed   :  { %295 = vxpose.xlu0.b32.cont [13/16] %v212_v10, 128 }
  0xf5   :  { %296 = vxpose.xlu0.b32.cont [14/16] %v213_v14, 128 }
  0xfd   :  { %297 = vxpose.xlu0.b32.cont [15/16] %v214_v18, 128 }
 0x105   :  { %298 = vxpose.xlu0.b32.end [16/16] %v215_v22, 128 }
 0x131   :  { %v299_v24 = vpop.trf.xlu0 }
 0x139   :  { %v300_v25 = vpop.trf.xlu0 }
 0x13a   :  { %v315_v26 = vadd.f32 %v300_v25, %v299_v24 }
 0x141   :  { %v301_v27 = vpop.trf.xlu0 }
 0x142   :  { %v316_v28 = vadd.f32 %v315_v26, %v301_v27 }
 0x149   :  { %v302_v29 = vpop.trf.xlu0 }
 0x14a   :  { %v317_v30 = vadd.f32 %v316_v28, %v302_v29 }
 0x151   :  { %v303_v31 = vpop.trf.xlu0 }
 0x152   :  { %v318_v32 = vadd.f32 %v317_v30, %v303_v31 }
 0x159   :  { %v304_v33 = vpop.trf.xlu0 }
 0x15a   :  { %v319_v40 = vadd.f32 %v318_v32, %v304_v33 }
 0x161   :  { %v305_v34 = vpop.trf.xlu0 }
 0x162   :  { %v320_v23 = vadd.f32 %v319_v40, %v305_v34 }
 0x169   :  { %v306_v35 = vpop.trf.xlu0 }
 0x16a   :  { %v321_v42 = vadd.f32 %v320_v23, %v306_v35 }
 0x171   :  { %v307_v36 = vpop.trf.xlu0 }
 0x172   :  { %v322_v43 = vadd.f32 %v321_v42, %v307_v36 }
 0x179   :  { %v308_v37 = vpop.trf.xlu0 }
 0x17a   :  { %v323_v44 = vadd.f32 %v322_v43, %v308_v37 }
 0x181   :  { %v309_v20 = vpop.trf.xlu0 }
 0x182   :  { %v324_v45 = vadd.f32 %v323_v44, %v309_v20 }
 0x189   :  { %v310_v38 = vpop.trf.xlu0 }
 0x18a   :  { %v325_v47 = vadd.f32 %v324_v45, %v310_v38 }
 0x191   :  { %v311_v39 = vpop.trf.xlu0 }
 0x192   :  { %v326_v48 = vadd.f32 %v325_v47, %v311_v39 }
 0x199   :  { %v312_v41 = vpop.trf.xlu0 }
 0x19a   :  { %v327_v49 = vadd.f32 %v326_v48, %v312_v41 }
 0x1a1   :  { %v313_v46 = vpop.trf.xlu0 }
 0x1a2   :  { %v328_v50 = vadd.f32 %v327_v49, %v313_v46 }
 0x1a9   :  { %v314_v51 = vpop.trf.xlu0 }
 0x1aa   :  { %v329_v52 = vadd.f32 %v328_v50, %v314_v51 }
 0x1ac   :  { %v330_v53 = vrot.slane %v329_v52, 4 }
 0x1ae   :  { %v331_v54 = vadd.f32 %v330_v53, %v329_v52 }
 0x1b0   :  { %v332_v55 = vrot.slane %v331_v54, 2 }
 0x1b2   :  { %v333_v56 = vadd.f32 %v332_v55, %v331_v54 }
 0x1b4   :  { %v334_v57 = vrot.slane %v333_v56, 1 }
 0x1b6   :  { %v335_v59 = vadd.f32 %v334_v57, %v333_v56 }
 0x1b8   :  { %v338_v60 = vadd.f32 %v337_v58, %v335_v59 }
 0x1ba   :  { %339 = vst [vmem:[#allocation4] sm:$0x1] %v338_v60 }
 0x1bb   :  { %350 = dma.vmem_to_hbm [thread:$0]  %s346_s10, 16, %s348_s13, [#allocation5]  }
 0x1bc   :  { %411 = dma.done.wait [#allocation5], 16  }
 0x1bd   :  { %412 = vsyncadd [#allocation5], 4294967280 }
 0x1be   :  { %355 = vsyncpa [#allocation5], 1 }

</bundles_post_ra>
